<compile_context>
chip_gen: v5e
topology: v5e:2x2
jax: 0.10.0
libtpu: 0.0.40
codegen_flags: <defaults>
</compile_context>

<pallas_src>
import jax
import jax.numpy as jnp
from jax.experimental import pallas as pl
from jax.experimental.pallas import tpu as pltpu


def _round_up(x, m):
    return ((x + m - 1) // m) * m


def _cosine_dist_kernel(s_ref, rot_ref, inv_s_ref, inv_ro_ref, out_ref, acc_ref):
    # s_ref:      (tm, tk)  tile of batch_s              (MXU dtype)
    # rot_ref:    (tk, tn)  tile of batch_ro^T           (MXU dtype, lane-dense N)
    # inv_s_ref:  (tm, 1)   f32 inverse L2 norms of s rows
    # inv_ro_ref: (1, tn)   f32 inverse L2 norms of ro rows
    # out_ref:    (tm, tn)  output tile
    # acc_ref:    (tm, tn)  f32 accumulator scratch (persists across the K axis)
    k = pl.program_id(2)

    @pl.when(k == 0)
    def _init():
        acc_ref[...] = jnp.zeros_like(acc_ref)

    acc_ref[...] += jnp.dot(
        s_ref[...], rot_ref[...], preferred_element_type=jnp.float32
    )

    @pl.when(k == pl.num_programs(2) - 1)
    def _finalize():
        out_ref[...] = (
            acc_ref[...] * inv_s_ref[...] * inv_ro_ref[...]
        ).astype(out_ref.dtype)


def _vmem_limit_bytes():
    """Generation-aware VMEM budget for the pallas_call."""
    try:
        cap = int(pltpu.get_tpu_info().vmem_capacity_bytes)
    except Exception:  # interpret mode / non-TPU lowering
        cap = 128 << 20
    if cap <= (64 << 20):        # v7x-class: 64 MiB VMEM per TensorCore
        return 48 << 20
    return 100 << 20             # v5e / v6e: 128 MiB per TensorCore


def _choose_tiles(M, N, D, in_itemsize, out_itemsize, usable_bytes):
    """Pick (tm, tn, tk): big square-ish MXU tiles that fit the VMEM budget."""
    m_full = _round_up(M, 128)
    n_full = _round_up(N, 128)
    d_full = _round_up(D, 128)

    def vmem_cost(tm, tn, tk):
        # Double-buffered inputs/output, single f32 accumulator scratch, plus the
        # (tm,1)/(1,tn) norm tiles (which pad to (tm,128)/(8,tn) f32 in VMEM).
        inv_bytes = 2 * (tm * 128 + 8 * tn) * 4
        in_bytes = 2 * (tm + tn) * tk * in_itemsize
        out_bytes = 2 * tm * tn * out_itemsize
        acc_bytes = tm * tn * 4
        return inv_bytes + in_bytes + out_bytes + acc_bytes

    mn_cands = (1024, 768, 512, 384, 256, 128)
    k_cands = (4096, 2048, 1024, 512, 256, 128)

    best = None
    for tm in sorted({min(c, m_full) for c in mn_cands}, reverse=True):
        for tn in sorted({min(c, n_full) for c in mn_cands}, reverse=True):
            for tk in sorted({min(c, d_full) for c in k_cands}, reverse=True):
                if vmem_cost(tm, tn, tk) > usable_bytes:
                    continue
                # Arithmetic intensity ~ tm*tn/(tm+tn) (prefer square & large),
                # then fewer K steps, then raw tile area.
                score = (tm * tn / (tm + tn), tk, tm * tn)
                if best is None or score > best[0]:
                    best = (score, (tm, tn, tk))
                break  # largest fitting tk for this (tm, tn)
    if best is None:
        return 128, 128, 128
    tm, tn, tk = best[1]

    # v7x has 2 TensorCores sharded over the parallel grid axes: if the parallel grid
    # collapsed to (1,1) but the problem is big enough, halve a tile so both cores work.
    if (m_full // tm) <= 1 and (n_full // tn) <= 1:
        if m_full >= 256:
            tm = max(128, ((m_full // 2) // 128) * 128)
        elif n_full >= 256:
            tn = max(128, ((n_full // 2) // 128) * 128)
    return tm, tn, tk


def nonlinear_head_distance(batch_s, batch_ro, *, tm=None, tn=None, tk=None,
                            matmul_dtype=None):
    """Pallas implementation of NonLinearHeadDistance.forward.

    batch_s:  (M, D)
    batch_ro: (N, D)
    returns:  (M, N) = normalize(batch_s) @ normalize(batch_ro).T

    matmul_dtype: optional dtype for the MXU operands (e.g. jnp.bfloat16 to halve
                  DMA bytes when tolerance allows). Norms/accumulation stay f32.
    """
    M, D = batch_s.shape
    N, D2 = batch_ro.shape
    assert D == D2, "feature dims must match"

    out_dtype = jnp.promote_types(batch_s.dtype, batch_ro.dtype)
    # Single explicit MXU dtype (handles mixed-dtype inputs deterministically).
    mxu_dtype = jnp.dtype(matmul_dtype) if matmul_dtype is not None else out_dtype
    in_isz = jnp.dtype(mxu_dtype).itemsize
    out_isz = jnp.dtype(out_dtype).itemsize

    vmem_limit = _vmem_limit_bytes()
    usable = vmem_limit - (6 << 20)   # headroom for compiler-internal scratch

    a_tm, a_tn, a_tk = _choose_tiles(M, N, D, in_isz, out_isz, usable)
    tm = a_tm if tm is None else tm
    tn = a_tn if tn is None else tn
    tk = a_tk if tk is None else tk
    for name, t in (("tm", tm), ("tn", tn), ("tk", tk)):
        if t % 128 != 0:
            raise ValueError(f"{name}={t} must be a multiple of 128")

    m_pad = _round_up(M, tm)
    n_pad = _round_up(N, tn)
    d_pad = _round_up(D, tk)

    # Exact inverse L2 norms in f32, computed once (matches torch `x / norm(x)`:
    # zero-norm rows give inf/NaN, no eps clamp).
    inv_s = 1.0 / jnp.sqrt(
        jnp.sum(batch_s.astype(jnp.float32) ** 2, axis=-1, keepdims=True))      # (M, 1)
    inv_ro = (1.0 / jnp.sqrt(
        jnp.sum(batch_ro.astype(jnp.float32) ** 2, axis=-1, keepdims=True))).T  # (1, N)

    s_p = batch_s.astype(mxu_dtype)
    rot_p = batch_ro.astype(mxu_dtype).T   # (D, N): canonical (tm,K)@(K,tn), lane-dense N

    # Pad only when needed (padded rows/cols scale to 0 via the zero-padded norms).
    if m_pad != M or d_pad != D:
        s_p = jnp.pad(s_p, ((0, m_pad - M), (0, d_pad - D)))
    if d_pad != D or n_pad != N:
        rot_p = jnp.pad(rot_p, ((0, d_pad - D), (0, n_pad - N)))
    if m_pad != M:
        inv_s = jnp.pad(inv_s, ((0, m_pad - M), (0, 0)))
    if n_pad != N:
        inv_ro = jnp.pad(inv_ro, ((0, 0), (0, n_pad - N)))

    grid = (m_pad // tm, n_pad // tn, d_pad // tk)

    cost = pl.CostEstimate(
        flops=2 * m_pad * n_pad * d_pad,
        transcendentals=0,
        bytes_accessed=(m_pad * d_pad + n_pad * d_pad) * in_isz
        + (m_pad + n_pad) * 4
        + m_pad * n_pad * out_isz,
    )

    out = pl.pallas_call(
        _cosine_dist_kernel,
        out_shape=jax.ShapeDtypeStruct((m_pad, n_pad), out_dtype),
        grid_spec=pltpu.PrefetchScalarGridSpec(
            num_scalar_prefetch=0,
            grid=grid,
            in_specs=[
                pl.BlockSpec((tm, tk), lambda i, j, k: (i, k)),   # s tile
                pl.BlockSpec((tk, tn), lambda i, j, k: (k, j)),   # ro^T tile
                pl.BlockSpec((tm, 1), lambda i, j, k: (i, 0)),    # inv_s
                pl.BlockSpec((1, tn), lambda i, j, k: (0, j)),    # inv_ro
            ],
            out_specs=pl.BlockSpec((tm, tn), lambda i, j, k: (i, j)),
            scratch_shapes=[pltpu.VMEM((tm, tn), jnp.float32)],
        ),
        compiler_params=pltpu.CompilerParams(
            dimension_semantics=("parallel", "parallel", "arbitrary"),
            vmem_limit_bytes=int(vmem_limit),
        ),
        cost_estimate=cost,
    )(s_p, rot_p, inv_s, inv_ro)

    if m_pad != M or n_pad != N:
        out = out[:M, :N]
    return out


def _reference(batch_s, batch_ro):
    l2_s = batch_s / jnp.linalg.norm(batch_s, axis=-1, keepdims=True)
    l2_ro = batch_ro / jnp.linalg.norm(batch_ro, axis=-1, keepdims=True)
    return jnp.matmul(l2_s, l2_ro.T)


if __name__ == "__main__":
    key = jax.random.PRNGKey(0)
    k1, k2 = jax.random.split(key)

    M, N, D = 16, 8, 32  # small demo shapes: M rows of s, N rows of ro, hidden dim D
    batch_s = jax.random.normal(k1, (M, D), dtype=jnp.float32)
    batch_ro = jax.random.normal(k2, (N, D), dtype=jnp.float32)

    out = nonlinear_head_distance(batch_s, batch_ro)
    out = jax.block_until_ready(out)

    ref = _reference(batch_s, batch_ro)
    assert out.shape == (M, N)
    assert jnp.allclose(out, ref, atol=1e-5, rtol=1e-5), "mismatch vs reference"

    print("KERNEL_OK")
</pallas_src>

<mosaic_0001>
module attributes {stable_mosaic.version = 11 : i64} {
  func.func @_cosine_dist_kernel(%arg0: i32, %arg1: i32, %arg2: i32, %arg3: memref<128x128xf32, #tpu.memory_space<vmem>>, %arg4: memref<128x128xf32, #tpu.memory_space<vmem>>, %arg5: memref<128x1xf32, #tpu.memory_space<vmem>>, %arg6: memref<1x128xf32, #tpu.memory_space<vmem>>, %arg7: memref<128x128xf32, #tpu.memory_space<vmem>>, %arg8: memref<128x128xf32, #tpu.memory_space<vmem>>) attributes {dimension_semantics = [#tpu.dimension_semantics<parallel>, #tpu.dimension_semantics<parallel>, #tpu.dimension_semantics<arbitrary>], iteration_bounds = array<i64: 1, 1, 1>, scalar_prefetch = 0 : i64, scratch_operands = 1 : i64, tpu.core_type = #tpu.core_type<tc>, window_params = [{transform_indices = @transform_0, window_bounds = array<i64: 128, 128>}, {transform_indices = @transform_1, window_bounds = array<i64: 128, 128>}, {transform_indices = @transform_2, window_bounds = array<i64: 128, 1>}, {transform_indices = @transform_3, window_bounds = array<i64: 1, 128>}, {transform_indices = @transform_4, window_bounds = array<i64: 128, 128>}]} {
    %c0_i32 = arith.constant 0 : i32
    %0 = arith.cmpi eq, %arg2, %c0_i32 : i32
    %1 = arith.extui %0 : i1 to i32
    %c0_i32_0 = arith.constant 0 : i32
    %2 = arith.cmpi ne, %1, %c0_i32_0 : i32
    scf.if %2 {
      %cst_10 = arith.constant 0.000000e+00 : f32
      %12 = vector.broadcast %cst_10 : f32 to vector<128x128xf32>
      %c0_11 = arith.constant 0 : index
      %c0_12 = arith.constant 0 : index
      %13 = vector.load %arg8[%c0_11, %c0_12] : memref<128x128xf32, #tpu.memory_space<vmem>>, vector<128x128xf32>
      tpu.vector_store %arg8[%c0_11, %c0_12], %12 {strides = array<i32>} : memref<128x128xf32, #tpu.memory_space<vmem>>, vector<128x128xf32>,
    } else {
    }
    %c0 = arith.constant 0 : index
    %c0_1 = arith.constant 0 : index
    %3 = vector.load %arg8[%c0, %c0_1] : memref<128x128xf32, #tpu.memory_space<vmem>>, vector<128x128xf32>
    %c0_2 = arith.constant 0 : index
    %c0_3 = arith.constant 0 : index
    %4 = vector.load %arg3[%c0_2, %c0_3] : memref<128x128xf32, #tpu.memory_space<vmem>>, vector<128x128xf32>
    %c0_4 = arith.constant 0 : index
    %c0_5 = arith.constant 0 : index
    %5 = vector.load %arg4[%c0_4, %c0_5] : memref<128x128xf32, #tpu.memory_space<vmem>>, vector<128x128xf32>
    %cst = arith.constant dense<0.000000e+00> : vector<128x128xf32>
    %6 = tpu.matmul %4, %5, %cst {dimension_numbers = #tpu.dot_dimension_numbers<[1], [0], [0], [1], [0, 0, 1, 1], [], []>} : vector<128x128xf32>, vector<128x128xf32>, vector<128x128xf32> -> vector<128x128xf32>
    %7 = arith.addf %3, %6 : vector<128x128xf32>
    %c0_6 = arith.constant 0 : index
    %c0_7 = arith.constant 0 : index
    %8 = vector.load %arg8[%c0_6, %c0_7] : memref<128x128xf32, #tpu.memory_space<vmem>>, vector<128x128xf32>
    tpu.vector_store %arg8[%c0_6, %c0_7], %7 {strides = array<i32>} : memref<128x128xf32, #tpu.memory_space<vmem>>, vector<128x128xf32>,
    %c0_i32_8 = arith.constant 0 : i32
    %9 = arith.cmpi eq, %arg2, %c0_i32_8 : i32
    %10 = arith.extui %9 : i1 to i32
    %c0_i32_9 = arith.constant 0 : i32
    %11 = arith.cmpi ne, %10, %c0_i32_9 : i32
    scf.if %11 {
      %c0_10 = arith.constant 0 : index
      %c0_11 = arith.constant 0 : index
      %12 = vector.load %arg8[%c0_10, %c0_11] : memref<128x128xf32, #tpu.memory_space<vmem>>, vector<128x128xf32>
      %c0_12 = arith.constant 0 : index
      %c0_13 = arith.constant 0 : index
      %13 = vector.load %arg5[%c0_12, %c0_13] : memref<128x1xf32, #tpu.memory_space<vmem>>, vector<128x1xf32>
      %14 = vector.broadcast %13 : vector<128x1xf32> to vector<128x128xf32>
      %15 = arith.mulf %12, %14 : vector<128x128xf32>
      %c0_14 = arith.constant 0 : index
      %c0_15 = arith.constant 0 : index
      %16 = vector.load %arg6[%c0_14, %c0_15] : memref<1x128xf32, #tpu.memory_space<vmem>>, vector<1x128xf32>
      %17 = vector.broadcast %16 : vector<1x128xf32> to vector<128x128xf32>
      %18 = arith.mulf %15, %17 : vector<128x128xf32>
      %c0_16 = arith.constant 0 : index
      %c0_17 = arith.constant 0 : index
      %19 = vector.load %arg7[%c0_16, %c0_17] : memref<128x128xf32, #tpu.memory_space<vmem>>, vector<128x128xf32>
      tpu.vector_store %arg7[%c0_16, %c0_17], %18 {strides = array<i32>} : memref<128x128xf32, #tpu.memory_space<vmem>>, vector<128x128xf32>,
    } else {
    }
    return
  }
  func.func @transform_0(%arg0: i32, %arg1: i32, %arg2: i32) -> (i32, i32) {
    %c0_i32 = arith.constant 0 : i32
    return %arg0, %arg2 : i32, i32
  }
  func.func @transform_1(%arg0: i32, %arg1: i32, %arg2: i32) -> (i32, i32) {
    %c0_i32 = arith.constant 0 : i32
    return %arg2, %arg1 : i32, i32
  }
  func.func @transform_2(%arg0: i32, %arg1: i32, %arg2: i32) -> (i32, i32) {
    %c0_i32 = arith.constant 0 : i32
    %c0_i32_0 = arith.constant 0 : i32
    return %arg0, %c0_i32 : i32, i32
  }
  func.func @transform_3(%arg0: i32, %arg1: i32, %arg2: i32) -> (i32, i32) {
    %c0_i32 = arith.constant 0 : i32
    %c0_i32_0 = arith.constant 0 : i32
    return %c0_i32, %arg1 : i32, i32
  }
  func.func @transform_4(%arg0: i32, %arg1: i32, %arg2: i32) -> (i32, i32) {
    %c0_i32 = arith.constant 0 : i32
    return %arg0, %arg1 : i32, i32
  }
}

</mosaic_0001>

<bundles_post_ra>
// kernel: tpu_custom_call.1
= control target key start
LH: loop header
LB: loop body
LE: loop exit
PB: predicated region body
PF: predicated region fallthrough
CT: control target
= control target key end

     0   :  { %9 = vsyncpa [#allocation4], 0  ;;  %s653_s0 = inlined_call_operand.vmem [shape: f32[128,128], index: 0, kind: input, shape index: {}]   ;;  %s654_s1 = inlined_call_operand.hbm [shape: f32[128,128], index: 1, kind: input, shape index: {}]   ;;  %s655_s2 = inlined_call_operand.vmem [shape: f32[128,1], index: 2, kind: input, shape index: {}]   ;;  %s656_s3 = inlined_call_operand.vmem [shape: f32[1,128], index: 3, kind: input, shape index: {}]   ;;  %s657_s4 = inlined_call_operand.hbm [shape: f32[128,128], index: 4, kind: output, shape index: {}]  }
   0x1   :  { %10 = vsyncpa [#allocation5], 0  ;;  %s17_s17 = sshll.u32 %s654_s1, 4  ;;  %s494_s18 = smov [#allocation3]   ;;  %s18_s17 = int_to_ptr.hbm [resolvable:$true] %s17_s17 }
   0x2   :  { %s19_s19 = sshll.u32 %s494_s18, 4  ;;  %s495_s20 = smov 128   ;;  %s20_s19 = int_to_ptr.vmem [resolvable:$true] %s19_s19 }
   0x3   :  { %s496_s21 = smov 8  }
   0x4   :  { %25 = dma.hbm_to_vmem [thread:$0]  %s18_s17, 2048, %s20_s19, [#allocation4], %s495_s20, %s495_s20, %s496_s21  }
   0x5   :  { %490 = dma.done.wait [#allocation4], 2048  }
   0x6   :  { %491 = vsyncadd [#allocation4], 4294965248  ;;  %v497_v0 = vmov 0   ;;  %v218_v1 = vld [vmem:[%s655_s2] sm:$0xff]  ;;  %v101_v2 = vld [vmem:[#allocation3 + $0x78] sm:$0xff]  ;;  %s372_s12 = sshll.u32 %s657_s4, 4  ;;  %s373_s12 = int_to_ptr.hbm [resolvable:$true] %s372_s12 }
   0x7   :  { %438 = vset.pattern.permute.xlu0 %v497_v0  ;;  %439 = vset.pattern.permute.xlu1 %v497_v0  ;;  %v100_v3 = vld [vmem:[#allocation3 + $0x70] sm:$0xff]  ;;  %v99_v4 = vld [vmem:[#allocation3 + $0x68] sm:$0xff]  ;;  %v98_v5 = vld [vmem:[#allocation3 + $0x60] sm:$0xff] }
   0x8   :  { %440 = vset.pattern.permute.xlu2 %v497_v0  ;;  %236 = vperm.xlu0 %438, %v218_v1   ;;  %v220_v6 = vld [vmem:[%s655_s2 + $0x10] sm:$0xff]  ;;  %v219_v7 = vld [vmem:[%s655_s2 + $0x8] sm:$0xff]  ;;  %v97_v8 = vld [vmem:[#allocation3 + $0x58] sm:$0xff] }
   0x9   :  { %102 = vmatpush.msra.mxu0 %v101_v2  ;;  %385 = vmatpush.msra.mxu1 %v101_v2  ;;  %v96_v9 = vld [vmem:[#allocation3 + $0x50] sm:$0xff]  ;;  %v95_v10 = vld [vmem:[#allocation3 + $0x48] sm:$0xff]  ;;  %v94_v11 = vld [vmem:[#allocation3 + $0x40] sm:$0xff] }
   0xa   :  { %386 = vmatpush.msra.mxu2 %v101_v2  ;;  %387 = vmatpush.msra.mxu3 %v101_v2  ;;  %v221_v12 = vld [vmem:[%s655_s2 + $0x18] sm:$0xff]  ;;  %v224_v13 = vld [vmem:[%s655_s2 + $0x30] sm:$0xff]  ;;  %v91_v16 = vld [vmem:[#allocation3 + $0x28] sm:$0xff] }
   0xb   :  { %103 = vmatpush.msra.mxu0 %v100_v3  ;;  %388 = vmatpush.msra.mxu1 %v100_v3  ;;  %v93_v14 = vld [vmem:[#allocation3 + $0x38] sm:$0xff]  ;;  %v92_v15 = vld [vmem:[#allocation3 + $0x30] sm:$0xff]  ;;  %v90_v17 = vld [vmem:[#allocation3 + $0x20] sm:$0xff] }
   0xc   :  { %389 = vmatpush.msra.mxu2 %v100_v3  ;;  %390 = vmatpush.msra.mxu3 %v100_v3  ;;  %v225_v18 = vld [vmem:[%s655_s2 + $0x38] sm:$0xff]  ;;  %v227_v19 = vld [vmem:[%s655_s2 + $0x48] sm:$0xff]  ;;  %v88_v21 = vld [vmem:[#allocation3 + $0x10] sm:$0xff] }
   0xd   :  { %104 = vmatpush.msra.mxu0 %v99_v4  ;;  %391 = vmatpush.msra.mxu1 %v99_v4  ;;  %v89_v20 = vld [vmem:[#allocation3 + $0x18] sm:$0xff]  ;;  %v87_v22 = vld [vmem:[#allocation3 + $0x8] sm:$0xff]  ;;  %v86_v23 = vld [vmem:[#allocation3] sm:$0xff] }
   0xe   :  { %392 = vmatpush.msra.mxu2 %v99_v4  ;;  %393 = vmatpush.msra.mxu3 %v99_v4  ;;  %v70_v24 = vld [vmem:[%s653_s0] sm:$0xff]  ;;  %v228_v29 = vld [vmem:[%s655_s2 + $0x50] sm:$0xff]  ;;  %v71_v31 = vld [vmem:[%s653_s0 + $0x8] sm:$0xff] }
   0xf   :  { %105 = vmatpush.msra.mxu0 %v98_v5  ;;  %394 = vmatpush.msra.mxu1 %v98_v5  ;;  %v74_v25 = vld [vmem:[%s653_s0 + $0x20] sm:$0xff]  ;;  %v75_v32 = vld [vmem:[%s653_s0 + $0x28] sm:$0xff]  ;;  %v233_v37 = vld [vmem:[%s655_s2 + $0x78] sm:$0xff] }
  0x10   :  { %395 = vmatpush.msra.mxu2 %v98_v5  ;;  %396 = vmatpush.msra.mxu3 %v98_v5  ;;  %v78_v26 = vld [vmem:[%s653_s0 + $0x40] sm:$0xff]  ;;  %v79_v33 = vld [vmem:[%s653_s0 + $0x48] sm:$0xff]  ;;  %v72_v38 = vld [vmem:[%s653_s0 + $0x10] sm:$0xff] }
  0x11   :  { %246 = vperm.xlu1 %439, %v220_v6   ;;  %241 = vperm.xlu0 %438, %v219_v7   ;;  %v82_v27 = vld [vmem:[%s653_s0 + $0x60] sm:$0xff]  ;;  %v83_v34 = vld [vmem:[%s653_s0 + $0x68] sm:$0xff]  ;;  %v76_v39 = vld [vmem:[%s653_s0 + $0x30] sm:$0xff] }
  0x12   :  { %106 = vmatpush.msra.mxu0 %v97_v8  ;;  %397 = vmatpush.msra.mxu1 %v97_v8  ;;  %v222_v28 = vld [vmem:[%s655_s2 + $0x20] sm:$0xff]  ;;  %v223_v35 = vld [vmem:[%s655_s2 + $0x28] sm:$0xff]  ;;  %v80_v40 = vld [vmem:[%s653_s0 + $0x50] sm:$0xff] }
  0x13   :  { %398 = vmatpush.msra.mxu2 %v97_v8  ;;  %399 = vmatpush.msra.mxu3 %v97_v8  ;;  %v230_v30 = vld [vmem:[%s655_s2 + $0x60] sm:$0xff]  ;;  %v231_v36 = vld [vmem:[%s655_s2 + $0x68] sm:$0xff]  ;;  %v84_v41 = vld [vmem:[%s653_s0 + $0x70] sm:$0xff] }
  0x14   :  { %107 = vmatpush.msra.mxu0 %v96_v9  ;;  %400 = vmatpush.msra.mxu1 %v96_v9  ;;  %v226_v42 = vld [vmem:[%s655_s2 + $0x40] sm:$0xff]  ;;  %v73_v43 = vld [vmem:[%s653_s0 + $0x18] sm:$0xff]  ;;  %v232_v48 = vld [vmem:[%s655_s2 + $0x70] sm:$0xff] }
  0x15   :  { %401 = vmatpush.msra.mxu2 %v96_v9  ;;  %402 = vmatpush.msra.mxu3 %v96_v9  ;;  %v77_v44 = vld [vmem:[%s653_s0 + $0x38] sm:$0xff]  ;;  %v629_v58 = vld [vmem:[%s656_s3] ss:$0 sm:$0xff] }
  0x16   :  { %108 = vmatpush.msra.mxu0 %v95_v10  ;;  %403 = vmatpush.msra.mxu1 %v95_v10  ;;  %v81_v45 = vld [vmem:[%s653_s0 + $0x58] sm:$0xff] }
  0x17   :  { %404 = vmatpush.msra.mxu2 %v95_v10  ;;  %405 = vmatpush.msra.mxu3 %v95_v10  ;;  %v85_v46 = vld [vmem:[%s653_s0 + $0x78] sm:$0xff] }
  0x18   :  { %109 = vmatpush.msra.mxu0 %v94_v11  ;;  %406 = vmatpush.msra.mxu1 %v94_v11  ;;  %v229_v47 = vld [vmem:[%s655_s2 + $0x58] sm:$0xff]  ;;  %s498_s2 = smov [#allocation6]  }
  0x19   :  { %407 = vmatpush.msra.mxu2 %v94_v11  ;;  %408 = vmatpush.msra.mxu3 %v94_v11  ;;  %s370_s3 = sshll.u32 %s498_s2, 4  ;;  %s371_s3 = int_to_ptr.vmem [resolvable:$true] %s370_s3 }
  0x1a   :  { %251 = vperm.xlu1 %439, %v221_v12   ;;  %266 = vperm.xlu0 %438, %v224_v13  }
  0x1b   :  { %110 = vmatpush.msra.mxu0 %v93_v14  ;;  %409 = vmatpush.msra.mxu1 %v93_v14 }
  0x1c   :  { %410 = vmatpush.msra.mxu2 %v93_v14  ;;  %411 = vmatpush.msra.mxu3 %v93_v14 }
  0x1d   :  { %111 = vmatpush.msra.mxu0 %v92_v15  ;;  %412 = vmatpush.msra.mxu1 %v92_v15 }
  0x1e   :  { %413 = vmatpush.msra.mxu2 %v92_v15  ;;  %414 = vmatpush.msra.mxu3 %v92_v15 }
  0x1f   :  { %112 = vmatpush.msra.mxu0 %v91_v16  ;;  %415 = vmatpush.msra.mxu1 %v91_v16 }
  0x20   :  { %416 = vmatpush.msra.mxu2 %v91_v16  ;;  %417 = vmatpush.msra.mxu3 %v91_v16 }
  0x21   :  { %113 = vmatpush.msra.mxu0 %v90_v17  ;;  %418 = vmatpush.msra.mxu1 %v90_v17 }
  0x22   :  { %419 = vmatpush.msra.mxu2 %v90_v17  ;;  %420 = vmatpush.msra.mxu3 %v90_v17 }
  0x23   :  { %271 = vperm.xlu1 %439, %v225_v18   ;;  %281 = vperm.xlu0 %438, %v227_v19  }
  0x24   :  { %114 = vmatpush.msra.mxu0 %v89_v20  ;;  %421 = vmatpush.msra.mxu1 %v89_v20 }
  0x25   :  { %422 = vmatpush.msra.mxu2 %v89_v20  ;;  %423 = vmatpush.msra.mxu3 %v89_v20 }
  0x26   :  { %115 = vmatpush.msra.mxu0 %v88_v21  ;;  %424 = vmatpush.msra.mxu1 %v88_v21 }
  0x27   :  { %425 = vmatpush.msra.mxu2 %v88_v21  ;;  %426 = vmatpush.msra.mxu3 %v88_v21 }
  0x28   :  { %116 = vmatpush.msra.mxu0 %v87_v22  ;;  %427 = vmatpush.msra.mxu1 %v87_v22 }
  0x29   :  { %428 = vmatpush.msra.mxu2 %v87_v22  ;;  %429 = vmatpush.msra.mxu3 %v87_v22 }
  0x2a   :  { %117 = vmatpush.msra.mxu0 %v86_v23  ;;  %430 = vmatpush.msra.mxu1 %v86_v23 }
  0x2b   :  { %431 = vmatpush.msra.mxu2 %v86_v23  ;;  %432 = vmatpush.msra.mxu3 %v86_v23 }
  0x2c   :  { %118 = vmatmul.f32.vlgmr.msra.gmra.mxu0 %v70_v24  ;;  %130 = vmatmul.f32.vlgmr.msra.gmra.mxu1 %v74_v25 }
  0x2d   :  { %142 = vmatmul.f32.vlgmr.msra.gmra.mxu2 %v78_v26  ;;  %154 = vmatmul.f32.vlgmr.msra.gmra.mxu3 %v82_v27 }
  0x2e   :  { %256 = vperm.xlu2 %440, %v222_v28   ;;  %286 = vperm.xlu1 %439, %v228_v29  }
  0x2f   :  { %296 = vperm.xlu0 %438, %v230_v30  }
  0x34   :  { %121 = vmatmul.f32.gmra.mxu0 %v71_v31  ;;  %133 = vmatmul.f32.gmra.mxu1 %v75_v32 }
  0x35   :  { %145 = vmatmul.f32.gmra.mxu2 %v79_v33  ;;  %157 = vmatmul.f32.gmra.mxu3 %v83_v34 }
  0x36   :  { %261 = vperm.xlu2 %440, %v223_v35   ;;  %301 = vperm.xlu1 %439, %v231_v36  }
  0x37   :  { %311 = vperm.xlu0 %438, %v233_v37  }
  0x3c   :  { %124 = vmatmul.f32.gmra.mxu0 %v72_v38  ;;  %136 = vmatmul.f32.gmra.mxu1 %v76_v39 }
  0x3d   :  { %148 = vmatmul.f32.gmra.mxu2 %v80_v40  ;;  %160 = vmatmul.f32.gmra.mxu3 %v84_v41 }
  0x3e   :  { %276 = vperm.xlu2 %440, %v226_v42  }
  0x44   :  { %127 = vmatmul.f32.gmra.mxu0 %v73_v43  ;;  %139 = vmatmul.f32.gmra.mxu1 %v77_v44 }
  0x45   :  { %151 = vmatmul.f32.gmra.mxu2 %v81_v45  ;;  %163 = vmatmul.f32.gmra.mxu3 %v85_v46 }
  0x46   :  { %291 = vperm.xlu2 %440, %v229_v47  }
  0x4e   :  { %306 = vperm.xlu2 %440, %v232_v48  }
  0x7a   :  { %v237_v49 = vpop.permute.xlu0 %236 }
  0x83   :  { %v247_v50 = vpop.permute.xlu1 %246  ;;  %v242_v51 = vpop.permute.xlu0 %241 }
  0x88   :  { %v257_v52 = vpop.permute.xlu2 %256 }
  0x8c   :  { %v252_v53 = vpop.permute.xlu1 %251  ;;  %v267_v54 = vpop.permute.xlu0 %266 }
  0x90   :  { %v262_v55 = vpop.permute.xlu2 %261 }
  0x95   :  { %v272_v56 = vpop.permute.xlu1 %271  ;;  %v282_v57 = vpop.permute.xlu0 %281 }
  0x98   :  { %v277_v63 = vpop.permute.xlu2 %276 }
  0xa0   :  { %v287_v2 = vpop.permute.xlu1 %286  ;;  %v292_v16 = vpop.permute.xlu2 %291 }
  0xa1   :  { %v297_v4 = vpop.permute.xlu0 %296 }
  0xa8   :  { %v302_v18 = vpop.permute.xlu1 %301  ;;  %v307_v31 = vpop.permute.xlu2 %306 }
  0xa9   :  { %v119_v59 = vpop.f32.mrf.mxu0  ;;  %v131_v60 = vpop.f32.mrf.mxu1 }
  0xaa   :  { %v314_v61 = vmul.f32 %v237_v49, %v119_v59  ;;  %v318_v62 = vmul.f32 %v257_v52, %v131_v60  ;;  %v312_v44 = vpop.permute.xlu0 %311 }
  0xac   :  { %v334_v0 = vmul.f32 %v629_v58, %v314_v61  ;;  %v338_v1 = vmul.f32 %v629_v58, %v318_v62 }
  0xae   :  { %350 = vst [vmem:[#allocation6] sm:$0xff] %v334_v0 }
  0xaf   :  { %354 = vst [vmem:[#allocation6 + $0x20] sm:$0xff] %v338_v1 }
  0xb0   :  { %v143_v3 = vpop.f32.mrf.mxu2  ;;  %v155_v6 = vpop.f32.mrf.mxu3 }
  0xb1   :  { %v322_v5 = vmul.f32 %v277_v63, %v143_v3  ;;  %v326_v7 = vmul.f32 %v297_v4, %v155_v6  ;;  %v122_v8 = vpop.f32.mrf.mxu0  ;;  %v134_v9 = vpop.f32.mrf.mxu1 }
  0xb2   :  { %v315_v11 = vmul.f32 %v242_v51, %v122_v8  ;;  %v319_v12 = vmul.f32 %v262_v55, %v134_v9 }
  0xb3   :  { %v342_v10 = vmul.f32 %v629_v58, %v322_v5  ;;  %v346_v13 = vmul.f32 %v629_v58, %v326_v7 }
  0xb4   :  { %v335_v14 = vmul.f32 %v629_v58, %v315_v11  ;;  %v339_v15 = vmul.f32 %v629_v58, %v319_v12 }
  0xb5   :  { %358 = vst [vmem:[#allocation6 + $0x40] sm:$0xff] %v342_v10 }
  0xb6   :  { %362 = vst [vmem:[#allocation6 + $0x60] sm:$0xff] %v346_v13 }
  0xb7   :  { %351 = vst [vmem:[#allocation6 + $0x8] sm:$0xff] %v335_v14 }
  0xb8   :  { %355 = vst [vmem:[#allocation6 + $0x28] sm:$0xff] %v339_v15  ;;  %v146_v17 = vpop.f32.mrf.mxu2  ;;  %v158_v20 = vpop.f32.mrf.mxu3 }
  0xb9   :  { %v323_v19 = vmul.f32 %v282_v57, %v146_v17  ;;  %v327_v21 = vmul.f32 %v302_v18, %v158_v20  ;;  %v125_v22 = vpop.f32.mrf.mxu0  ;;  %v137_v23 = vpop.f32.mrf.mxu1 }
  0xba   :  { %v316_v25 = vmul.f32 %v247_v50, %v125_v22  ;;  %v320_v26 = vmul.f32 %v267_v54, %v137_v23 }
  0xbb   :  { %v343_v24 = vmul.f32 %v629_v58, %v323_v19  ;;  %v347_v27 = vmul.f32 %v629_v58, %v327_v21 }
  0xbc   :  { %v336_v28 = vmul.f32 %v629_v58, %v316_v25  ;;  %v340_v29 = vmul.f32 %v629_v58, %v320_v26 }
  0xbd   :  { %359 = vst [vmem:[#allocation6 + $0x48] sm:$0xff] %v343_v24 }
  0xbe   :  { %363 = vst [vmem:[#allocation6 + $0x68] sm:$0xff] %v347_v27 }
  0xbf   :  { %352 = vst [vmem:[#allocation6 + $0x10] sm:$0xff] %v336_v28 }
  0xc0   :  { %356 = vst [vmem:[#allocation6 + $0x30] sm:$0xff] %v340_v29  ;;  %v149_v30 = vpop.f32.mrf.mxu2  ;;  %v161_v33 = vpop.f32.mrf.mxu3 }
  0xc1   :  { %v324_v32 = vmul.f32 %v287_v2, %v149_v30  ;;  %v328_v34 = vmul.f32 %v307_v31, %v161_v33  ;;  %v128_v35 = vpop.f32.mrf.mxu0  ;;  %v140_v36 = vpop.f32.mrf.mxu1 }
  0xc2   :  { %v317_v38 = vmul.f32 %v252_v53, %v128_v35  ;;  %v321_v39 = vmul.f32 %v272_v56, %v140_v36 }
  0xc3   :  { %v344_v37 = vmul.f32 %v629_v58, %v324_v32  ;;  %v348_v40 = vmul.f32 %v629_v58, %v328_v34 }
  0xc4   :  { %v337_v41 = vmul.f32 %v629_v58, %v317_v38  ;;  %v341_v42 = vmul.f32 %v629_v58, %v321_v39 }
  0xc5   :  { %360 = vst [vmem:[#allocation6 + $0x50] sm:$0xff] %v344_v37 }
  0xc6   :  { %364 = vst [vmem:[#allocation6 + $0x70] sm:$0xff] %v348_v40 }
  0xc7   :  { %353 = vst [vmem:[#allocation6 + $0x18] sm:$0xff] %v337_v41 }
  0xc8   :  { %357 = vst [vmem:[#allocation6 + $0x38] sm:$0xff] %v341_v42  ;;  %v152_v43 = vpop.f32.mrf.mxu2  ;;  %v164_v46 = vpop.f32.mrf.mxu3 }
  0xc9   :  { %v325_v45 = vmul.f32 %v292_v16, %v152_v43  ;;  %v329_v47 = vmul.f32 %v312_v44, %v164_v46 }
  0xcb   :  { %v345_v48 = vmul.f32 %v629_v58, %v325_v45  ;;  %v349_v49 = vmul.f32 %v629_v58, %v329_v47 }
  0xcd   :  { %361 = vst [vmem:[#allocation6 + $0x58] sm:$0xff] %v345_v48 }
  0xce   :  { %365 = vst [vmem:[#allocation6 + $0x78] sm:$0xff] %v349_v49 }
  0xcf   :  { %378 = dma.vmem_to_hbm [thread:$0]  %s371_s3, 2048, %s373_s12, [#allocation5], %s495_s20, %s495_s20, %s496_s21  }
  0xd0   :  { %492 = dma.done.wait [#allocation5], 2048  }
  0xd1   :  { %493 = vsyncadd [#allocation5], 4294965248 }
  0xd2   :  { %383 = vsyncpa [#allocation4], 1 }
  0xd3   :  { %384 = vsyncpa [#allocation5], 1 }

</bundles_post_ra>
